<compile_context>
chip_gen: v7x
topology: tpu7x:2x2x1
jax: 0.10.0
libtpu: 0.0.40
codegen_flags: <defaults>
</compile_context>

<pallas_src>
import jax
import jax.numpy as jnp
from jax.experimental import pallas as pl
from jax.experimental.pallas import tpu as pltpu


def _round_up(n, m):
    return ((n + m - 1) // m) * m


def _rllib_nn_kernel(x_ref, w1_ref, b1_ref, w34_ref, b34_ref, out_ref):
    # x_ref:   (TB, K*K) f32      w1_ref:  (K*K, 32) f32   b1_ref: (1, 32) f32
    # w34_ref: (32, 8)   f32      b34_ref: (1, 8)    f32
    # out_ref: (TB, 8)   f32  -- cols 0..5 = act, col 6 = val, col 7 = pad
    x = x_ref[...]

    # relu(conv2d(x)) -- conv over the full-extent kernel == matmul (f32 accum)
    h = jnp.dot(x, w1_ref[...], preferred_element_type=jnp.float32) + b1_ref[...]
    h = jnp.maximum(h, 0.0)                                    # (TB, 32)

    # fused heads: one matmul for [W3 | W4 | 0]
    z = jnp.dot(h, w34_ref[...], preferred_element_type=jnp.float32) + b34_ref[...]

    # act columns (0..5): sigmoid(z)*2-1 == tanh(z/2); val column (6): raw z
    col = jax.lax.broadcasted_iota(jnp.int32, z.shape, dimension=1)
    out_ref[...] = jnp.where(col < 6, jnp.tanh(0.5 * z), z)


def init_params(field_of_view, key):
    """Deterministic synthetic parameters with the same shapes as NN.__init__."""
    k = 2 * field_of_view + 1
    keys = jax.random.split(key, 6)

    def unif(rng, shape, fan_in):
        bound = 1.0 / jnp.sqrt(jnp.float32(fan_in))
        return jax.random.uniform(rng, shape, jnp.float32, -bound, bound)

    params = {
        # Conv2d(1, 32, k): weight (32, 1, k, k), bias (32,)
        "w1": unif(keys[0], (32, 1, k, k), k * k),
        "b1": unif(keys[1], (32,), k * k),
        # Linear(32, 6): weight (6, 32), bias (6,)
        "w3": unif(keys[2], (6, 32), 32),
        "b3": unif(keys[3], (6,), 32),
        # Linear(32, 1): weight (1, 32), bias (1,)
        "w4": unif(keys[4], (1, 32), 32),
        "b4": unif(keys[5], (1,), 32),
    }
    # TODO(synk): NN also defines l2 = Linear(256, 256), but forward() never
    # uses it, so no parameters / compute are emitted for it here.
    return params


def _choose_batch_tile(B, tb_max, min_steps=8):
    """Largest legal tile <= tb_max, preferring >= min_steps grid steps for
    pipelining / megacore once B is large enough."""
    TB = _round_up(pl.cdiv(B, min_steps), 8)   # multiple of 8 sublanes
    TB = min(TB, tb_max)
    if TB >= B:
        TB = B                                  # single full-extent block (always legal)
    return max(TB, 1)


def rllib_nn_forward(obs, params, *, tb_max=8192):
    """Mirrors RLlibNN.forward + value_function.

    obs: (B, 1, K, K) float32 (NCHW like the PyTorch module)
    returns ((act, hids), val) with act (B, 6), hids = {}, val (B,) (squeezed).
    """
    B = obs.shape[0]
    K = obs.shape[-1]
    KK = K * K

    # Contiguous view; no dtype cast, no padding pass -> single HBM read of obs
    # happens inside the pallas_call pipeline.
    x_flat = obs.reshape(B, KK)                                 # (B, K*K) f32

    w1 = jnp.transpose(params["w1"].reshape(32, KK)).astype(jnp.float32)  # (K*K, 32)
    b1 = params["b1"].reshape(1, 32).astype(jnp.float32)

    # fuse the two heads into one (32, 8) matmul (6 act cols + 1 val col + 1 pad)
    w3 = jnp.transpose(params["w3"]).astype(jnp.float32)        # (32, 6)
    w4 = jnp.transpose(params["w4"]).astype(jnp.float32)        # (32, 1)
    w34 = jnp.concatenate([w3, w4, jnp.zeros((32, 1), jnp.float32)], axis=1)  # (32, 8)
    b34 = jnp.concatenate(
        [params["b3"], params["b4"], jnp.zeros((1,), jnp.float32)]
    ).reshape(1, 8).astype(jnp.float32)

    TB = _choose_batch_tile(B, tb_max)
    grid = (pl.cdiv(B, TB),)   # ragged tail block handled by Pallas; no jnp.pad

    cost = pl.CostEstimate(
        flops=2 * B * (KK * 32 + 32 * 8),
        transcendentals=8 * B,
        bytes_accessed=B * KK * 4 + B * 8 * 4 + KK * 32 * 4 + (32 * 8 + 8 + 32) * 4,
    )

    out = pl.pallas_call(
        _rllib_nn_kernel,
        out_shape=jax.ShapeDtypeStruct((B, 8), jnp.float32),
        grid=grid,
        in_specs=[
            pl.BlockSpec((TB, KK), lambda i: (i, 0)),    # x: tiled over batch
            pl.BlockSpec((KK, 32), lambda i: (0, 0)),    # w1: VMEM-resident
            pl.BlockSpec((1, 32), lambda i: (0, 0)),     # b1
            pl.BlockSpec((32, 8), lambda i: (0, 0)),     # fused w3|w4
            pl.BlockSpec((1, 8), lambda i: (0, 0)),      # fused b3|b4
        ],
        out_specs=pl.BlockSpec((TB, 8), lambda i: (i, 0)),
        compiler_params=pltpu.CompilerParams(
            dimension_semantics=("parallel",),           # shards batch across TCs on v7x
            # ~TB*2 KiB of double-buffered tiles at TB=8192 ~= 16 MiB; 32 MiB
            # scoped limit is legal on v5e/v6e/v7x and leaves headroom.
            vmem_limit_bytes=32 * 1024 * 1024,
        ),
        cost_estimate=cost,
    )(x_flat, w1, b1, w34, b34)

    act = out[:, :6]                                     # (B, 6)
    val = out[:, 6]                                      # (B,)  == self.val.squeeze(-1)
    hids = {}
    return (act, hids), val


if __name__ == "__main__":
    field_of_view = 2                 # kernel_width = 5 -> obs (B, 1, 5, 5)
    kernel_width = 2 * field_of_view + 1
    batch = 2

    key = jax.random.PRNGKey(0)
    k_obs, k_params = jax.random.split(key)

    obs = jax.random.normal(
        k_obs, (batch, 1, kernel_width, kernel_width), dtype=jnp.float32)
    params = init_params(field_of_view, k_params)

    (act, hids), val = rllib_nn_forward(obs, params)
    jax.block_until_ready((act, val))

    # pure-JAX reference check (conv-as-matmul, same math as the PyTorch module)
    x_ref = obs.reshape(batch, kernel_width * kernel_width)
    w1_ref = params["w1"].reshape(32, -1)
    h_ref = jnp.maximum(x_ref @ w1_ref.T + params["b1"], 0.0)
    act_ref = jax.nn.sigmoid(h_ref @ params["w3"].T + params["b3"]) * 2.0 - 1.0
    val_ref = (h_ref @ params["w4"].T + params["b4"])[:, 0]

    assert act.shape == (batch, 6)
    assert val.shape == (batch,)
    assert hids == {}
    assert bool(jnp.all(jnp.isfinite(act))) and bool(jnp.all(jnp.isfinite(val)))
    assert bool(jnp.all(act >= -1.0)) and bool(jnp.all(act <= 1.0))
    assert bool(jnp.allclose(act, act_ref, atol=1e-5, rtol=1e-5))
    assert bool(jnp.allclose(val, val_ref, atol=1e-5, rtol=1e-5))
    print("KERNEL_OK")
</pallas_src>

<mosaic_0001>
module attributes {stable_mosaic.version = 11 : i64} {
  func.func @_rllib_nn_kernel(%arg0: i32, %arg1: memref<2x25xf32, #tpu.memory_space<vmem>>, %arg2: memref<25x32xf32, #tpu.memory_space<vmem>>, %arg3: memref<1x32xf32, #tpu.memory_space<vmem>>, %arg4: memref<32x8xf32, #tpu.memory_space<vmem>>, %arg5: memref<1x8xf32, #tpu.memory_space<vmem>>, %arg6: memref<2x8xf32, #tpu.memory_space<vmem>>) attributes {dimension_semantics = [#tpu.dimension_semantics<parallel>], iteration_bounds = array<i64: 1>, scalar_prefetch = 0 : i64, scratch_operands = 0 : i64, tpu.core_type = #tpu.core_type<tc>, window_params = [{transform_indices = @transform_0, window_bounds = array<i64: 2, 25>}, {pipeline_mode = #tpu.pipeline_mode<synchronous>, transform_indices = @transform_1, window_bounds = array<i64: 25, 32>}, {pipeline_mode = #tpu.pipeline_mode<synchronous>, transform_indices = @transform_2, window_bounds = array<i64: 1, 32>}, {pipeline_mode = #tpu.pipeline_mode<synchronous>, transform_indices = @transform_3, window_bounds = array<i64: 32, 8>}, {pipeline_mode = #tpu.pipeline_mode<synchronous>, transform_indices = @transform_4, window_bounds = array<i64: 1, 8>}, {transform_indices = @transform_5, window_bounds = array<i64: 2, 8>}]} {
    %c0 = arith.constant 0 : index
    %c0_0 = arith.constant 0 : index
    %0 = vector.load %arg1[%c0, %c0_0] : memref<2x25xf32, #tpu.memory_space<vmem>>, vector<2x25xf32>
    %c0_1 = arith.constant 0 : index
    %c0_2 = arith.constant 0 : index
    %1 = vector.load %arg2[%c0_1, %c0_2] : memref<25x32xf32, #tpu.memory_space<vmem>>, vector<25x32xf32>
    %cst = arith.constant dense<0.000000e+00> : vector<2x32xf32>
    %2 = tpu.matmul %0, %1, %cst {dimension_numbers = #tpu.dot_dimension_numbers<[1], [0], [0], [1], [0, 0, 1, 1], [], []>} : vector<2x25xf32>, vector<25x32xf32>, vector<2x32xf32> -> vector<2x32xf32>
    %c0_3 = arith.constant 0 : index
    %c0_4 = arith.constant 0 : index
    %3 = vector.load %arg3[%c0_3, %c0_4] : memref<1x32xf32, #tpu.memory_space<vmem>>, vector<1x32xf32>
    %4 = vector.broadcast %3 : vector<1x32xf32> to vector<2x32xf32>
    %5 = arith.addf %2, %4 : vector<2x32xf32>
    %cst_5 = arith.constant 0.000000e+00 : f32
    %6 = vector.broadcast %cst_5 : f32 to vector<2x32xf32>
    %7 = arith.maximumf %5, %6 : vector<2x32xf32>
    %c0_6 = arith.constant 0 : index
    %c0_7 = arith.constant 0 : index
    %8 = vector.load %arg4[%c0_6, %c0_7] : memref<32x8xf32, #tpu.memory_space<vmem>>, vector<32x8xf32>
    %cst_8 = arith.constant dense<0.000000e+00> : vector<2x8xf32>
    %9 = tpu.matmul %7, %8, %cst_8 {dimension_numbers = #tpu.dot_dimension_numbers<[1], [0], [0], [1], [0, 0, 1, 1], [], []>} : vector<2x32xf32>, vector<32x8xf32>, vector<2x8xf32> -> vector<2x8xf32>
    %c0_9 = arith.constant 0 : index
    %c0_10 = arith.constant 0 : index
    %10 = vector.load %arg5[%c0_9, %c0_10] : memref<1x8xf32, #tpu.memory_space<vmem>>, vector<1x8xf32>
    %11 = vector.broadcast %10 : vector<1x8xf32> to vector<2x8xf32>
    %12 = arith.addf %9, %11 : vector<2x8xf32>
    %13 = tpu.iota {dimensions = array<i32: 1>} : vector<2x8xi32>
    %c6_i32 = arith.constant 6 : i32
    %14 = vector.broadcast %c6_i32 : i32 to vector<2x8xi32>
    %15 = arith.cmpi slt, %13, %14 : vector<2x8xi32>
    %cst_11 = arith.constant 5.000000e-01 : f32
    %16 = vector.broadcast %cst_11 : f32 to vector<2x8xf32>
    %17 = arith.mulf %16, %12 : vector<2x8xf32>
    %18 = math.tanh %17 : vector<2x8xf32>
    %19 = arith.select %15, %18, %12 : vector<2x8xi1>, vector<2x8xf32>
    %c0_12 = arith.constant 0 : index
    %c0_13 = arith.constant 0 : index
    %20 = vector.load %arg6[%c0_12, %c0_13] : memref<2x8xf32, #tpu.memory_space<vmem>>, vector<2x8xf32>
    tpu.vector_store %arg6[%c0_12, %c0_13], %19 {strides = array<i32>} : memref<2x8xf32, #tpu.memory_space<vmem>>, vector<2x8xf32>,
    return
  }
  func.func @transform_0(%arg0: i32) -> (i32, i32) {
    %c0_i32 = arith.constant 0 : i32
    %c0_i32_0 = arith.constant 0 : i32
    return %arg0, %c0_i32 : i32, i32
  }
  func.func @transform_1(%arg0: i32) -> (i32, i32) {
    %c0_i32 = arith.constant 0 : i32
    %c0_i32_0 = arith.constant 0 : i32
    %c0_i32_1 = arith.constant 0 : i32
    return %c0_i32, %c0_i32_0 : i32, i32
  }
  func.func @transform_2(%arg0: i32) -> (i32, i32) {
    %c0_i32 = arith.constant 0 : i32
    %c0_i32_0 = arith.constant 0 : i32
    %c0_i32_1 = arith.constant 0 : i32
    return %c0_i32, %c0_i32_0 : i32, i32
  }
  func.func @transform_3(%arg0: i32) -> (i32, i32) {
    %c0_i32 = arith.constant 0 : i32
    %c0_i32_0 = arith.constant 0 : i32
    %c0_i32_1 = arith.constant 0 : i32
    return %c0_i32, %c0_i32_0 : i32, i32
  }
  func.func @transform_4(%arg0: i32) -> (i32, i32) {
    %c0_i32 = arith.constant 0 : i32
    %c0_i32_0 = arith.constant 0 : i32
    %c0_i32_1 = arith.constant 0 : i32
    return %c0_i32, %c0_i32_0 : i32, i32
  }
  func.func @transform_5(%arg0: i32) -> (i32, i32) {
    %c0_i32 = arith.constant 0 : i32
    %c0_i32_0 = arith.constant 0 : i32
    return %arg0, %c0_i32 : i32, i32
  }
}

</mosaic_0001>

<bundles_post_ra>
// kernel: tpu_custom_call.1
= control target key start
LH: loop header
LB: loop body
LE: loop exit
PB: predicated region body
PF: predicated region fallthrough
CT: control target
= control target key end

     0   :  { %vm37_vm0 = vcmask 1040384   ;;  %v300_v3 = vmov 0.0|0.0   ;;  %vm301_vm1 = vmmov 0   ;;  %v302_v6 = vmov 0.0   ;;  %s381_s0 = inlined_call_operand.vmem [shape: f32[2,25], index: 0, kind: input, shape index: {}]   ;;  %s382_s1 = inlined_call_operand.vmem [shape: f32[25,32], index: 1, kind: input, shape index: {}]   ;;  %s383_s2 = inlined_call_operand.vmem [shape: f32[1,32], index: 2, kind: input, shape index: {}]   ;;  %s384_s3 = inlined_call_operand.vmem [shape: f32[32,8], index: 3, kind: input, shape index: {}]   ;;  %s385_s4 = inlined_call_operand.vmem [shape: f32[1,8], index: 4, kind: input, shape index: {}]   ;;  %s386_s5 = inlined_call_operand.hbm [shape: f32[2,8], index: 5, kind: output, shape index: {}]  }
   0x1   :  { %v22_v0 = vld [vmem:[%s382_s1] sm:$0xff]  ;;  %v23_v1 = vld [vmem:[%s382_s1 + $0x8] sm:$0xff]  ;;  %v24_v2 = vld [vmem:[%s382_s1 + $0x10] sm:$0xff]  ;;  %256 = vmatprep.subr.bf16.mxu0 %v300_v3  ;;  %263 = vmatprep.subr.bf16.mxu1 %v300_v3 }
   0x2   :  { %v257_v4 = vpack.c.bf16 %v23_v1, %v22_v0  ;;  %v25_v5 = vld [vmem:[%s382_s1 + $0x18] sm:$0x1]  ;;  %242 = vmatprep.mubr.msk.f32.mxu0 %vm301_vm1, %v302_v6  ;;  %v112_v7 = vld [vmem:[%s384_s3] sm:$0xff]  ;;  %v113_v8 = vld [vmem:[%s384_s3 + $0x8] sm:$0xff]  ;;  %253 = vmatprep.mubr.msk.f32.mxu1 %vm301_vm1, %v302_v6 }
   0x3   :  { %v260_v9 = vpack.c.bf16 %v25_v5, %v24_v2  ;;  %v264_v10 = vpack.c.bf16 %v113_v8, %v112_v7 }
   0x4   :  { %258 = vmatpush3.bf16.msra.mxu0 %v257_v4 }
   0x5   :  { %10 = vsyncpa [#allocation3], 0  ;;  %259 = vmatprep.subr.bf16.mxu0 %v300_v3  ;;  %vm303_vm2 = vmmov 1   ;;  %265 = vmatpush3.bf16.msra.mxu1 %v264_v10  ;;  %v21_v11 = vld [vmem:[%s381_s0] sm:$0x3]  ;;  %vm33_vm4 = vcmask 203776   ;;  %v197_v25 = vlaneseq }
   0x6   :  { %vm261_vm3 = vmpackc.low %vm37_vm0, %vm303_vm2  ;;  %266 = vmatprep.subr.bf16.mxu1 %v300_v3  ;;  %v114_v12 = vld [vmem:[%s384_s3 + $0x10] sm:$0xff]  ;;  %v115_v13 = vld [vmem:[%s384_s3 + $0x18] sm:$0xff]  ;;  %vm123_vm5 = vcmask 261120   ;;  %s304_s3 = smov [#allocation2]   ;;  %vm203_vm7 = vcmask 58368  }
   0x7   :  { %v267_v14 = vpack.c.bf16 %v115_v13, %v114_v12  ;;  %v219_v15 = vld [vmem:[%s383_s2] ss:$0 sm:$0xff]  ;;  %v198_v26 = vand.u32 127, %v197_v25  ;;  %s211_s13 = sshll.u32 %s304_s3, 4  ;;  %s212_s13 = int_to_ptr.vmem [resolvable:$true] %s211_s13 }
   0x8   :  { %262 = vmatpush3.bf16.msk.msra.mxu0 %vm261_vm3, %v260_v9  ;;  %v222_v20 = vld [vmem:[%s385_s4] ss:$0 sm:$0xff]  ;;  %s276_s2 = scalar_lea.vmem %s212_s13, 32  ;;  %p281_p1 = scmp.lt.s32.totalorder %s212_s13, %s212_s13 }
   0x9   :  { %268 = vmatpush3.bf16.msra.mxu1 %v267_v14  ;;  %vm199_vm6 = vcmp.lt.s32.totalorder %v198_v26, 6  ;;  %p277_p0 = scmp.ne.s32.totalorder %s212_s13, %s276_s2  ;;  %p282_p2 = scmp.lt.s32.totalorder %s276_s2, %s276_s2 }
   0xb   :  { %243 = vmatmul.mubr.msk.f32.vlgmr.msra.gmra.mrb[0].mxu0 %vm33_vm4, %v21_v11  ;;  %p283_p3 = por %p282_p2, %p281_p1 }
   0xd   :  { %p284_p4 = pnand %p283_p3, %p277_p0 }
  0xde   :  { %v107_v16 = vpop.f32.mrb[0].mxu0 }
  0xdf   :  { %v108_v17 = vadd.f32 %v219_v15, %v107_v16  ;;  %v244_v18 = vpop.f32.mrb[1].mxu0 }
  0xe1   :  { %v111_v19 = vmax.f32 %v108_v17, 0.0 }
  0xe3   :  { %254 = vmatmul.mubr.msk.f32.vlgmr.msra.gmra.mrb[0].mxu1 %vm123_vm5, %v111_v19 }
 0x1b6   :  { %v193_v21 = vpop.f32.mrb[0].mxu1 }
 0x1b7   :  { %v194_v22 = vadd.f32 %v222_v20, %v193_v21  ;;  %v255_v23 = vpop.f32.mrb[1].mxu1 }
 0x1b9   :  { %v200_v24 = vmul.f32 0.5, %v194_v22 }
 0x1bb   :  { %274 = vtanh.f32 %v200_v24 }
 0x1c5   :  { %v275_v27 = vpop.eup %274 }
 0x1c6   :  { %v202_v28 = vsel %vm199_vm6, %v275_v27, %v194_v22 }
 0x1c7   :  { %204 = vst.msk [vmem:[#allocation2] sm:$0x3] %vm203_vm7, %v202_v28 }
 0x1c8   :  { %287 = shalt.err (!%p284_p4)
}
 0x1c9   :  { %s288_s15 = scalar_lea.hbm %s386_s5, 32 }
 0x1ca   :  { %p289_p5 = scmp.ne.s32.totalorder %s386_s5, %s288_s15  ;;  %p292_p6 = scmp.lt.u32.totalorder %s288_s15, %s386_s5 }
 0x1cc   :  { %p294_p7 = pnand %p292_p6, %p289_p5 }
 0x1ce   :  { %297 = shalt.err (!%p294_p7)
}
 0x1cf   :  { %214 = dma.vmem_to_hbm [thread:$0]  %s212_s13, 32, %s386_s5, [#allocation3]  }
 0x1d0   :  { %298 = dma.done.wait [#allocation3], 32  }
 0x1d1   :  { %299 = vsyncadd [#allocation3], 4294967264 }
 0x1d2   :  { %218 = vsyncpa [#allocation3], 1 }

</bundles_post_ra>
